<compile_context>
chip_gen: v5e
topology: v5e:2x2
jax: 0.10.0
libtpu: 0.0.40
codegen_flags: <defaults>
</compile_context>

<pallas_src>
import functools

import jax
import jax.numpy as jnp
from jax.experimental import pallas as pl
from jax.experimental.pallas import tpu as pltpu


_HALF_PAD = 64     # pad each real/imag half to 64 -> combined width multiple of 128
_MAX_TILE_B = 256  # batch tile for the parallel grid axis (production batches)


def _round_up(n, m):
    return ((n + m - 1) // m) * m


def _pad2d(a, rows, cols):
    r, c = a.shape
    return jnp.pad(a, ((0, rows - r), (0, cols - c)))


# ----------------------------------------------------------------------------
# Fused kernel: the entire MLP in one pallas_call (per batch tile)
# ----------------------------------------------------------------------------
def _fused_mlp_kernel(n_layers, compute_dtype, x_ref, *refs):
    """refs = (w0, b0, w1, b1, ..., w_{L-1}, b_{L-1}, y_ref).

    x_ref : [TB, 2*K0p]         activation as [real | imag] halves (compute dtype)
    w_l   : [2*Kp_l, 2*Np_l]    block weight [[wr, wi], [-wi, wr]] (compute dtype)
    b_l   : [TB, 2*Np_l]        bias pre-broadcast to tile height (f32)
    y_ref : [TB, 2*Np_last]     f32
    """
    y_ref = refs[-1]
    h = x_ref[...]
    for li in range(n_layers):
        w = refs[2 * li][...]
        b = refs[2 * li + 1][...]
        # One block matmul realizes the full complex linear:
        #   [xr|xi] @ [[wr, wi], [-wi, wr]] = [xr@wr - xi@wi | xr@wi + xi@wr]
        # f32 accumulation regardless of operand dtype.
        h = jnp.dot(h, w, preferred_element_type=jnp.float32) + b
        if li < n_layers - 1:
            # CartReLU: ReLU on real and imag parts independently -> one max on
            # the concatenated [yr | yi] block; cast back to the MXU input dtype.
            h = jnp.maximum(h, 0.0).astype(compute_dtype)
    y_ref[...] = h


@functools.partial(jax.jit, static_argnames=("output_size",))
def mlp_forward(x_complex, packed_params, output_size):
    """Forward pass of the complex MLP via one fused Pallas kernel (jitted).

    x_complex     : complex64 [B, ...] (flattened to [B, input_size])
    packed_params : tuple of (w_block [2Kp,2Np], b_block [1,2Np] f32)
    returns       : complex64 [B, output_size, 1]   (matches x.unsqueeze(-1))
    """
    compute_dtype = packed_params[0][0].dtype
    sublane = 16 if compute_dtype == jnp.bfloat16 else 8   # bf16 packs 16 rows/vreg

    B = x_complex.shape[0]
    x_flat = x_complex.reshape(B, -1)
    K = x_flat.shape[1]

    Bp = _round_up(B, sublane)
    if Bp > _MAX_TILE_B:
        tile_b = _MAX_TILE_B
        Bp = _round_up(Bp, tile_b)
    else:
        tile_b = Bp
    Kp = _round_up(K, _HALF_PAD)

    xr = _pad2d(jnp.real(x_flat).astype(jnp.float32), Bp, Kp)
    xi = _pad2d(jnp.imag(x_flat).astype(jnp.float32), Bp, Kp)
    x_blk = jnp.concatenate([xr, xi], axis=1).astype(compute_dtype)  # [Bp, 2*Kp]

    n_layers = len(packed_params)
    flat_args, in_specs = [], []
    flops = 0
    bytes_accessed = x_blk.size * x_blk.dtype.itemsize
    for w_blk, b_blk in packed_params:
        # Pre-broadcast bias to tile height: plain elementwise add in-kernel,
        # no per-layer [1,N] sublane broadcast inside the unrolled loop.
        b_tile = jnp.broadcast_to(b_blk, (tile_b, b_blk.shape[1]))
        flat_args += [w_blk, b_tile]
        in_specs += [pl.BlockSpec(w_blk.shape, lambda i: (0, 0)),    # resident
                     pl.BlockSpec(b_tile.shape, lambda i: (0, 0))]   # resident
        flops += 2 * Bp * w_blk.shape[0] * w_blk.shape[1]
        bytes_accessed += (w_blk.size * w_blk.dtype.itemsize
                           + b_tile.size * b_tile.dtype.itemsize)
    np_last = packed_params[-1][0].shape[1] // 2           # padded last out width
    bytes_accessed += Bp * 2 * np_last * 4                 # f32 output

    kernel = functools.partial(_fused_mlp_kernel, n_layers, compute_dtype)

    out = pl.pallas_call(
        kernel,
        grid=(Bp // tile_b,),
        in_specs=[pl.BlockSpec((tile_b, 2 * Kp), lambda i: (i, 0))] + in_specs,
        out_specs=pl.BlockSpec((tile_b, 2 * np_last), lambda i: (i, 0)),
        out_shape=jax.ShapeDtypeStruct((Bp, 2 * np_last), jnp.float32),
        compiler_params=pltpu.CompilerParams(
            dimension_semantics=("parallel",)),
        cost_estimate=pl.CostEstimate(
            flops=flops, transcendentals=0, bytes_accessed=bytes_accessed),
    )(x_blk, *flat_args)

    yr = out[:B, :output_size]
    yi = out[:B, np_last:np_last + output_size]
    y = (yr + 1j * yi).astype(jnp.complex64)
    return y[..., None]                                    # unsqueeze(-1)


# ----------------------------------------------------------------------------
# Parameter construction / packing
# ----------------------------------------------------------------------------
def init_mlp_params(key, input_size, hidden_sizes, output_size):
    """Deterministic synthetic params (complex64 as f32 real/imag pairs).

    Weight stored as [in, out] (i.e. W^T relative to nn.Linear's [out, in]).
    """
    sizes = [input_size] + list(hidden_sizes) + [output_size]
    params = []
    for li in range(len(sizes) - 1):
        fan_in, fan_out = sizes[li], sizes[li + 1]
        key, k1, k2, k3, k4 = jax.random.split(key, 5)
        bound = 1.0 / jnp.sqrt(jnp.float32(fan_in))
        wr = jax.random.uniform(k1, (fan_in, fan_out), jnp.float32, -bound, bound)
        wi = jax.random.uniform(k2, (fan_in, fan_out), jnp.float32, -bound, bound)
        br = jax.random.uniform(k3, (1, fan_out), jnp.float32, -bound, bound)
        bi = jax.random.uniform(k4, (1, fan_out), jnp.float32, -bound, bound)
        params.append((wr, wi, br, bi))
    return params


def pack_params(params, weight_dtype=jnp.float32):
    """Host-side (one-time) packing of each layer into padded block form.

    (wr, wi, br, bi) with wr/wi [K, N] ->
      w_block [2Kp, 2Np] = [[wr, wi], [-wi, wr]]  (zero-padded, cast to weight_dtype)
      b_block [1, 2Np]   = [br | bi]              (kept f32: added post-accumulation)
    Zero padding keeps padded activation lanes exactly zero through every layer.
    """
    packed = []
    for wr, wi, br, bi in params:
        K, N = wr.shape
        Kp, Np = _round_up(K, _HALF_PAD), _round_up(N, _HALF_PAD)
        wr_p = _pad2d(wr, Kp, Np)
        wi_p = _pad2d(wi, Kp, Np)
        w_blk = jnp.concatenate(
            [jnp.concatenate([wr_p, wi_p], axis=1),
             jnp.concatenate([-wi_p, wr_p], axis=1)],
            axis=0).astype(weight_dtype)                   # [2Kp, 2Np]
        br_p = _pad2d(br, 1, Np)
        bi_p = _pad2d(bi, 1, Np)
        b_blk = jnp.concatenate([br_p, bi_p], axis=1)      # [1, 2Np] f32
        packed.append((w_blk, b_blk))
    return tuple(packed)


# ----------------------------------------------------------------------------
# Pure-JAX reference (unpadded, complex dtype)
# ----------------------------------------------------------------------------
def mlp_forward_reference(x_complex, params):
    B = x_complex.shape[0]
    x = x_complex.reshape(B, -1).astype(jnp.complex64)
    n_layers = len(params)
    for li, (wr, wi, br, bi) in enumerate(params):
        w = (wr + 1j * wi).astype(jnp.complex64)
        b = (br + 1j * bi).astype(jnp.complex64)
        x = x @ w + b
        if li < n_layers - 1:
            x = jnp.maximum(jnp.real(x), 0.0) + 1j * jnp.maximum(jnp.imag(x), 0.0)
            x = x.astype(jnp.complex64)
    return x[..., None]


if __name__ == "__main__":
    # Small shapes consistent with the module (scaled-down input/hidden dims).
    batch = 4
    input_size = 32
    hidden_sizes = [64, 48, 32]
    output_size = 10

    key = jax.random.PRNGKey(0)
    key, kx_r, kx_i, kp = jax.random.split(key, 4)

    x = (jax.random.normal(kx_r, (batch, input_size), jnp.float32)
         + 1j * jax.random.normal(kx_i, (batch, input_size), jnp.float32)
         ).astype(jnp.complex64)

    params = init_mlp_params(kp, input_size, hidden_sizes, output_size)
    ref = jax.block_until_ready(mlp_forward_reference(x, params))

    # --- f32 packed weights: faithful to complex64 math, tight check. -------
    packed_f32 = pack_params(params, jnp.float32)
    out_f32 = jax.block_until_ready(mlp_forward(x, packed_f32, output_size))
    assert out_f32.shape == (batch, output_size, 1), out_f32.shape
    assert out_f32.dtype == jnp.complex64, out_f32.dtype
    assert jnp.allclose(out_f32, ref, atol=1e-3, rtol=1e-3), "f32 mismatch vs reference"

    # --- bf16 packed weights (f32 accumulate): production MXU path. ---------
    packed_bf16 = pack_params(params, jnp.bfloat16)
    out_bf16 = jax.block_until_ready(mlp_forward(x, packed_bf16, output_size))
    assert out_bf16.shape == (batch, output_size, 1), out_bf16.shape
    assert jnp.allclose(out_bf16, ref, atol=5e-2, rtol=5e-2), "bf16 mismatch vs reference"

    print("KERNEL_OK")
</pallas_src>

<mosaic_0001>
module attributes {stable_mosaic.version = 11 : i64} {
  func.func @_fused_mlp_kernel(%arg0: i32, %arg1: memref<8x128xf32, #tpu.memory_space<vmem>>, %arg2: memref<128x128xf32, #tpu.memory_space<vmem>>, %arg3: memref<8x128xf32, #tpu.memory_space<vmem>>, %arg4: memref<128x128xf32, #tpu.memory_space<vmem>>, %arg5: memref<8x128xf32, #tpu.memory_space<vmem>>, %arg6: memref<128x128xf32, #tpu.memory_space<vmem>>, %arg7: memref<8x128xf32, #tpu.memory_space<vmem>>, %arg8: memref<128x128xf32, #tpu.memory_space<vmem>>, %arg9: memref<8x128xf32, #tpu.memory_space<vmem>>, %arg10: memref<8x128xf32, #tpu.memory_space<vmem>>) attributes {dimension_semantics = [#tpu.dimension_semantics<parallel>], iteration_bounds = array<i64: 1>, scalar_prefetch = 0 : i64, scratch_operands = 0 : i64, tpu.core_type = #tpu.core_type<tc>, window_params = [{transform_indices = @transform_0, window_bounds = array<i64: 8, 128>}, {pipeline_mode = #tpu.pipeline_mode<synchronous>, transform_indices = @transform_1, window_bounds = array<i64: 128, 128>}, {pipeline_mode = #tpu.pipeline_mode<synchronous>, transform_indices = @transform_2, window_bounds = array<i64: 8, 128>}, {pipeline_mode = #tpu.pipeline_mode<synchronous>, transform_indices = @transform_3, window_bounds = array<i64: 128, 128>}, {pipeline_mode = #tpu.pipeline_mode<synchronous>, transform_indices = @transform_4, window_bounds = array<i64: 8, 128>}, {pipeline_mode = #tpu.pipeline_mode<synchronous>, transform_indices = @transform_5, window_bounds = array<i64: 128, 128>}, {pipeline_mode = #tpu.pipeline_mode<synchronous>, transform_indices = @transform_6, window_bounds = array<i64: 8, 128>}, {pipeline_mode = #tpu.pipeline_mode<synchronous>, transform_indices = @transform_7, window_bounds = array<i64: 128, 128>}, {pipeline_mode = #tpu.pipeline_mode<synchronous>, transform_indices = @transform_8, window_bounds = array<i64: 8, 128>}, {transform_indices = @transform_9, window_bounds = array<i64: 8, 128>}]} {
    %c0 = arith.constant 0 : index
    %c0_0 = arith.constant 0 : index
    %0 = vector.load %arg1[%c0, %c0_0] : memref<8x128xf32, #tpu.memory_space<vmem>>, vector<8x128xf32>
    %c0_1 = arith.constant 0 : index
    %c0_2 = arith.constant 0 : index
    %1 = vector.load %arg2[%c0_1, %c0_2] : memref<128x128xf32, #tpu.memory_space<vmem>>, vector<128x128xf32>
    %c0_3 = arith.constant 0 : index
    %c0_4 = arith.constant 0 : index
    %2 = vector.load %arg3[%c0_3, %c0_4] : memref<8x128xf32, #tpu.memory_space<vmem>>, vector<8x128xf32>
    %cst = arith.constant dense<0.000000e+00> : vector<8x128xf32>
    %3 = tpu.matmul %0, %1, %cst {dimension_numbers = #tpu.dot_dimension_numbers<[1], [0], [0], [1], [0, 0, 1, 1], [], []>} : vector<8x128xf32>, vector<128x128xf32>, vector<8x128xf32> -> vector<8x128xf32>
    %4 = arith.addf %3, %2 : vector<8x128xf32>
    %cst_5 = arith.constant 0.000000e+00 : f32
    %5 = vector.broadcast %cst_5 : f32 to vector<8x128xf32>
    %6 = arith.maximumf %4, %5 : vector<8x128xf32>
    %c0_6 = arith.constant 0 : index
    %c0_7 = arith.constant 0 : index
    %7 = vector.load %arg4[%c0_6, %c0_7] : memref<128x128xf32, #tpu.memory_space<vmem>>, vector<128x128xf32>
    %c0_8 = arith.constant 0 : index
    %c0_9 = arith.constant 0 : index
    %8 = vector.load %arg5[%c0_8, %c0_9] : memref<8x128xf32, #tpu.memory_space<vmem>>, vector<8x128xf32>
    %cst_10 = arith.constant dense<0.000000e+00> : vector<8x128xf32>
    %9 = tpu.matmul %6, %7, %cst_10 {dimension_numbers = #tpu.dot_dimension_numbers<[1], [0], [0], [1], [0, 0, 1, 1], [], []>} : vector<8x128xf32>, vector<128x128xf32>, vector<8x128xf32> -> vector<8x128xf32>
    %10 = arith.addf %9, %8 : vector<8x128xf32>
    %cst_11 = arith.constant 0.000000e+00 : f32
    %11 = vector.broadcast %cst_11 : f32 to vector<8x128xf32>
    %12 = arith.maximumf %10, %11 : vector<8x128xf32>
    %c0_12 = arith.constant 0 : index
    %c0_13 = arith.constant 0 : index
    %13 = vector.load %arg6[%c0_12, %c0_13] : memref<128x128xf32, #tpu.memory_space<vmem>>, vector<128x128xf32>
    %c0_14 = arith.constant 0 : index
    %c0_15 = arith.constant 0 : index
    %14 = vector.load %arg7[%c0_14, %c0_15] : memref<8x128xf32, #tpu.memory_space<vmem>>, vector<8x128xf32>
    %cst_16 = arith.constant dense<0.000000e+00> : vector<8x128xf32>
    %15 = tpu.matmul %12, %13, %cst_16 {dimension_numbers = #tpu.dot_dimension_numbers<[1], [0], [0], [1], [0, 0, 1, 1], [], []>} : vector<8x128xf32>, vector<128x128xf32>, vector<8x128xf32> -> vector<8x128xf32>
    %16 = arith.addf %15, %14 : vector<8x128xf32>
    %cst_17 = arith.constant 0.000000e+00 : f32
    %17 = vector.broadcast %cst_17 : f32 to vector<8x128xf32>
    %18 = arith.maximumf %16, %17 : vector<8x128xf32>
    %c0_18 = arith.constant 0 : index
    %c0_19 = arith.constant 0 : index
    %19 = vector.load %arg8[%c0_18, %c0_19] : memref<128x128xf32, #tpu.memory_space<vmem>>, vector<128x128xf32>
    %c0_20 = arith.constant 0 : index
    %c0_21 = arith.constant 0 : index
    %20 = vector.load %arg9[%c0_20, %c0_21] : memref<8x128xf32, #tpu.memory_space<vmem>>, vector<8x128xf32>
    %cst_22 = arith.constant dense<0.000000e+00> : vector<8x128xf32>
    %21 = tpu.matmul %18, %19, %cst_22 {dimension_numbers = #tpu.dot_dimension_numbers<[1], [0], [0], [1], [0, 0, 1, 1], [], []>} : vector<8x128xf32>, vector<128x128xf32>, vector<8x128xf32> -> vector<8x128xf32>
    %22 = arith.addf %21, %20 : vector<8x128xf32>
    %c0_23 = arith.constant 0 : index
    %c0_24 = arith.constant 0 : index
    %23 = vector.load %arg10[%c0_23, %c0_24] : memref<8x128xf32, #tpu.memory_space<vmem>>, vector<8x128xf32>
    tpu.vector_store %arg10[%c0_23, %c0_24], %22 {strides = array<i32>} : memref<8x128xf32, #tpu.memory_space<vmem>>, vector<8x128xf32>,
    return
  }
  func.func @transform_0(%arg0: i32) -> (i32, i32) {
    %c0_i32 = arith.constant 0 : i32
    %c0_i32_0 = arith.constant 0 : i32
    return %arg0, %c0_i32 : i32, i32
  }
  func.func @transform_1(%arg0: i32) -> (i32, i32) {
    %c0_i32 = arith.constant 0 : i32
    %c0_i32_0 = arith.constant 0 : i32
    %c0_i32_1 = arith.constant 0 : i32
    return %c0_i32, %c0_i32_0 : i32, i32
  }
  func.func @transform_2(%arg0: i32) -> (i32, i32) {
    %c0_i32 = arith.constant 0 : i32
    %c0_i32_0 = arith.constant 0 : i32
    %c0_i32_1 = arith.constant 0 : i32
    return %c0_i32, %c0_i32_0 : i32, i32
  }
  func.func @transform_3(%arg0: i32) -> (i32, i32) {
    %c0_i32 = arith.constant 0 : i32
    %c0_i32_0 = arith.constant 0 : i32
    %c0_i32_1 = arith.constant 0 : i32
    return %c0_i32, %c0_i32_0 : i32, i32
  }
  func.func @transform_4(%arg0: i32) -> (i32, i32) {
    %c0_i32 = arith.constant 0 : i32
    %c0_i32_0 = arith.constant 0 : i32
    %c0_i32_1 = arith.constant 0 : i32
    return %c0_i32, %c0_i32_0 : i32, i32
  }
  func.func @transform_5(%arg0: i32) -> (i32, i32) {
    %c0_i32 = arith.constant 0 : i32
    %c0_i32_0 = arith.constant 0 : i32
    %c0_i32_1 = arith.constant 0 : i32
    return %c0_i32, %c0_i32_0 : i32, i32
  }
  func.func @transform_6(%arg0: i32) -> (i32, i32) {
    %c0_i32 = arith.constant 0 : i32
    %c0_i32_0 = arith.constant 0 : i32
    %c0_i32_1 = arith.constant 0 : i32
    return %c0_i32, %c0_i32_0 : i32, i32
  }
  func.func @transform_7(%arg0: i32) -> (i32, i32) {
    %c0_i32 = arith.constant 0 : i32
    %c0_i32_0 = arith.constant 0 : i32
    %c0_i32_1 = arith.constant 0 : i32
    return %c0_i32, %c0_i32_0 : i32, i32
  }
  func.func @transform_8(%arg0: i32) -> (i32, i32) {
    %c0_i32 = arith.constant 0 : i32
    %c0_i32_0 = arith.constant 0 : i32
    %c0_i32_1 = arith.constant 0 : i32
    return %c0_i32, %c0_i32_0 : i32, i32
  }
  func.func @transform_9(%arg0: i32) -> (i32, i32) {
    %c0_i32 = arith.constant 0 : i32
    %c0_i32_0 = arith.constant 0 : i32
    return %arg0, %c0_i32 : i32, i32
  }
}

</mosaic_0001>

<bundles_post_ra>
// kernel: custom-call.1
= control target key start
LH: loop header
LB: loop body
LE: loop exit
PB: predicated region body
PF: predicated region fallthrough
CT: control target
= control target key end

     0   :  { %s56_s0 = inlined_call_operand.hbm [shape: c64[4,32], index: 0, kind: input, shape index: {}]   ;;  %s57_s1 = inlined_call_operand.vmem [shape: f32[4,32], index: 1, kind: output, shape index: {}]  }
   0x1   :  { %s2_s8 = scalar_lea.hbm %s56_s0, 4 }
   0x2   :  { %3 = vsyncpa [#allocation0], 0  ;;  %s5_s9 = sshll.u32 %s2_s8, 4  ;;  %s7_s12 = sshll.u32 %s57_s1, 4  ;;  %s6_s9 = int_to_ptr.hbm [resolvable:$true] %s5_s9  ;;  %s8_s12 = int_to_ptr.vmem [resolvable:$true] %s7_s12 }
   0x3   :  { %10 = dma.hbm_to_vmem [thread:$0]  %s6_s9, 64, %s8_s12, [#allocation0] }
   0x4   :  { %38 = dma.done.wait [#allocation0], 64  }
   0x5   :  { %39 = vsyncadd [#allocation0], 4294967232 }
   0x6   :  { %13 = vsyncpa [#allocation0], 1 }

// kernel: custom-call
= control target key start
LH: loop header
LB: loop body
LE: loop exit
PB: predicated region body
PF: predicated region fallthrough
CT: control target
= control target key end

     0   :  { %2 = vsyncpa [#allocation0], 0  ;;  %s55_s0 = inlined_call_operand.hbm [shape: c64[4,32], index: 0, kind: input, shape index: {}]   ;;  %s56_s1 = inlined_call_operand.vmem [shape: f32[4,32], index: 1, kind: output, shape index: {}]  }
   0x1   :  { %s4_s8 = sshll.u32 %s55_s0, 4  ;;  %s6_s11 = sshll.u32 %s56_s1, 4  ;;  %s5_s8 = int_to_ptr.hbm [resolvable:$true] %s4_s8  ;;  %s7_s11 = int_to_ptr.vmem [resolvable:$true] %s6_s11 }
   0x2   :  { %9 = dma.hbm_to_vmem [thread:$0]  %s5_s8, 64, %s7_s11, [#allocation0] }
   0x3   :  { %37 = dma.done.wait [#allocation0], 64  }
   0x4   :  { %38 = vsyncadd [#allocation0], 4294967232 }
   0x5   :  { %12 = vsyncpa [#allocation0], 1 }

// kernel: custom-call.2
= control target key start
LH: loop header
LB: loop body
LE: loop exit
PB: predicated region body
PF: predicated region fallthrough
CT: control target
= control target key end

     0   :  { %s105_s0 = inlined_call_operand.vmem [shape: f32[4,10,1], index: 0, kind: input, shape index: {}]   ;;  %s106_s1 = inlined_call_operand.vmem [shape: f32[4,10,1], index: 1, kind: input, shape index: {}]   ;;  %s107_s2 = inlined_call_operand.hbm [shape: c64[4,10,1], index: 2, kind: output, shape index: {}]  }
   0x1   :  { %s3_s11 = scalar_lea.hbm %s107_s2, 4 }
   0x2   :  { %4 = vsyncpa [#allocation0], 0  ;;  %s6_s14 = sshll.u32 %s105_s0, 4  ;;  %s8_s17 = sshll.u32 %s107_s2, 4  ;;  %s7_s14 = int_to_ptr.vmem [resolvable:$true] %s6_s14  ;;  %s9_s17 = int_to_ptr.hbm [resolvable:$true] %s8_s17 }
   0x3   :  { %11 = dma.vmem_to_hbm [thread:$0]  %s7_s14, 64, %s9_s17, [#allocation0] }
   0x4   :  { %74 = dma.done.wait [#allocation0], 64  }
   0x5   :  { %75 = vsyncadd [#allocation0], 4294967232 }
   0x6   :  { %14 = vsyncpa [#allocation0], 1 }
   0x7   :  { %15 = vsyncpa [#allocation1], 0  ;;  %s17_s20 = sshll.u32 %s106_s1, 4  ;;  %s19_s21 = sshll.u32 %s3_s11, 4  ;;  %s18_s20 = int_to_ptr.vmem [resolvable:$true] %s17_s20  ;;  %s20_s21 = int_to_ptr.hbm [resolvable:$true] %s19_s21 }
   0x8   :  { %22 = dma.vmem_to_hbm [thread:$0]  %s18_s20, 64, %s20_s21, [#allocation1] }
   0x9   :  { %76 = dma.done.wait [#allocation1], 64  }
   0xa   :  { %77 = vsyncadd [#allocation1], 4294967232 }
   0xb   :  { %25 = vsyncpa [#allocation1], 1 }

// kernel: mlp_forward.1
= control target key start
LH: loop header
LB: loop body
LE: loop exit
PB: predicated region body
PF: predicated region fallthrough
CT: control target
= control target key end

     0   :  { %14 = vsyncpa [#allocation3], 0  ;;  %s449_s0 = inlined_call_operand.vmem [shape: f32[8,128], index: 0, kind: input, shape index: {}]   ;;  %s450_s1 = inlined_call_operand.hbm [shape: f32[128,128], index: 1, kind: input, shape index: {}]   ;;  %s451_s2 = inlined_call_operand.vmem [shape: f32[8,128], index: 2, kind: input, shape index: {}]   ;;  %s452_s3 = inlined_call_operand.hbm [shape: f32[128,128], index: 3, kind: input, shape index: {}]   ;;  %s453_s4 = inlined_call_operand.vmem [shape: f32[8,128], index: 4, kind: input, shape index: {}]   ;;  %s454_s5 = inlined_call_operand.hbm [shape: f32[128,128], index: 5, kind: input, shape index: {}]   ;;  %s455_s6 = inlined_call_operand.vmem [shape: f32[8,128], index: 6, kind: input, shape index: {}]   ;;  %s456_s7 = inlined_call_operand.hbm [shape: f32[128,128], index: 7, kind: input, shape index: {}]   ;;  %s457_s8 = inlined_call_operand.vmem [shape: f32[8,128], index: 8, kind: input, shape index: {}]   ;;  %s458_s9 = inlined_call_operand.vmem [shape: f32[8,128], index: 9, kind: output, shape index: {}]  }
   0x1   :  { %15 = vsyncpa [#allocation5], 0 }
   0x2   :  { %16 = vsyncpa [#allocation8], 0  ;;  %s38_s11 = sshll.u32 %s452_s3, 4  ;;  %s363_s12 = smov [#allocation4]   ;;  %s39_s11 = int_to_ptr.hbm [resolvable:$true] %s38_s11 }
   0x3   :  { %s40_s13 = sshll.u32 %s363_s12, 4  ;;  %s23_s16 = sshll.u32 %s450_s1, 4  ;;  %s41_s13 = int_to_ptr.vmem [resolvable:$true] %s40_s13  ;;  %s24_s16 = int_to_ptr.hbm [resolvable:$true] %s23_s16 }
   0x4   :  { %s364_s17 = smov 128   ;;  %s365_s18 = smov 8  }
   0x5   :  { %46 = dma.hbm_to_vmem [thread:$0]  %s39_s11, 2048, %s41_s13, [#allocation5], %s364_s17, %s364_s17, %s365_s18  }
   0x6   :  { %s366_s19 = smov [#allocation2]   ;;  %s53_s23 = sshll.u32 %s454_s5, 4  ;;  %s54_s23 = int_to_ptr.hbm [resolvable:$true] %s53_s23 }
   0x7   :  { %s25_s20 = sshll.u32 %s366_s19, 4  ;;  %s68_s25 = sshll.u32 %s456_s7, 4  ;;  %s26_s20 = int_to_ptr.vmem [resolvable:$true] %s25_s20  ;;  %s69_s25 = int_to_ptr.hbm [resolvable:$true] %s68_s25 }
   0x8   :  { %31 = dma.hbm_to_vmem [thread:$0]  %s24_s16, 2048, %s26_s20, [#allocation3], %s364_s17, %s364_s17, %s365_s18  }
   0x9   :  { %s367_s26 = smov [#allocation6]   ;;  %s368_s1 = smov [#allocation7]  }
   0xa   :  { %s55_s27 = sshll.u32 %s367_s26, 4  ;;  %s70_s28 = sshll.u32 %s368_s1, 4  ;;  %s56_s27 = int_to_ptr.vmem [resolvable:$true] %s55_s27  ;;  %s71_s28 = int_to_ptr.vmem [resolvable:$true] %s70_s28 }
   0xb   :  { %61 = dma.hbm_to_vmem [thread:$0]  %s54_s23, 2048, %s56_s27, [#allocation5], %s364_s17, %s364_s17, %s365_s18  }
   0xc   :  { %76 = dma.hbm_to_vmem [thread:$0]  %s69_s25, 2048, %s71_s28, [#allocation8], %s364_s17, %s364_s17, %s365_s18  }
   0xd   :  { %357 = dma.done.wait [#allocation3], 2048  }
   0xe   :  { %358 = vsyncadd [#allocation3], 4294965248 }
   0xf   :  { %359 = dma.done.wait [#allocation5], 4096  }
  0x10   :  { %360 = vsyncadd [#allocation5], 4294963200 }
  0x11   :  { %361 = dma.done.wait [#allocation8], 2048  }
  0x12   :  { %362 = vsyncadd [#allocation8], 4294965248  ;;  %v111_v0 = vld [vmem:[#allocation2 + $0x78] sm:$0xff]  ;;  %v110_v1 = vld [vmem:[#allocation2 + $0x70] sm:$0xff] }
  0x13   :  { %113 = vmatpush.msra.mxu0 %v111_v0  ;;  %v109_v2 = vld [vmem:[#allocation2 + $0x68] sm:$0xff]  ;;  %v108_v3 = vld [vmem:[#allocation2 + $0x60] sm:$0xff]  ;;  %v149_v4 = vld [vmem:[#allocation4 + $0x78] sm:$0xff] }
  0x14   :  { %v107_v5 = vld [vmem:[#allocation2 + $0x58] sm:$0xff]  ;;  %151 = vmatpush.msra.mxu1 %v149_v4  ;;  %v148_v6 = vld [vmem:[#allocation4 + $0x70] sm:$0xff]  ;;  %v147_v7 = vld [vmem:[#allocation4 + $0x68] sm:$0xff] }
  0x15   :  { %114 = vmatpush.msra.mxu0 %v110_v1  ;;  %v106_v8 = vld [vmem:[#allocation2 + $0x50] sm:$0xff]  ;;  %v146_v9 = vld [vmem:[#allocation4 + $0x60] sm:$0xff]  ;;  %v105_v10 = vld [vmem:[#allocation2 + $0x48] sm:$0xff] }
  0x16   :  { %152 = vmatpush.msra.mxu1 %v148_v6  ;;  %v145_v11 = vld [vmem:[#allocation4 + $0x58] sm:$0xff]  ;;  %v104_v12 = vld [vmem:[#allocation2 + $0x40] sm:$0xff]  ;;  %v144_v13 = vld [vmem:[#allocation4 + $0x50] sm:$0xff] }
  0x17   :  { %115 = vmatpush.msra.mxu0 %v109_v2  ;;  %v103_v14 = vld [vmem:[#allocation2 + $0x38] sm:$0xff]  ;;  %v143_v15 = vld [vmem:[#allocation4 + $0x48] sm:$0xff]  ;;  %v102_v16 = vld [vmem:[#allocation2 + $0x30] sm:$0xff] }
  0x18   :  { %153 = vmatpush.msra.mxu1 %v147_v7  ;;  %v142_v17 = vld [vmem:[#allocation4 + $0x40] sm:$0xff]  ;;  %v101_v18 = vld [vmem:[#allocation2 + $0x28] sm:$0xff]  ;;  %v141_v19 = vld [vmem:[#allocation4 + $0x38] sm:$0xff] }
  0x19   :  { %116 = vmatpush.msra.mxu0 %v108_v3  ;;  %v100_v20 = vld [vmem:[#allocation2 + $0x20] sm:$0xff]  ;;  %v140_v21 = vld [vmem:[#allocation4 + $0x30] sm:$0xff]  ;;  %v99_v22 = vld [vmem:[#allocation2 + $0x18] sm:$0xff] }
  0x1a   :  { %154 = vmatpush.msra.mxu1 %v146_v9  ;;  %v139_v23 = vld [vmem:[#allocation4 + $0x28] sm:$0xff]  ;;  %v98_v24 = vld [vmem:[#allocation2 + $0x10] sm:$0xff]  ;;  %v138_v25 = vld [vmem:[#allocation4 + $0x20] sm:$0xff] }
  0x1b   :  { %117 = vmatpush.msra.mxu0 %v107_v5  ;;  %v97_v26 = vld [vmem:[#allocation2 + $0x8] sm:$0xff]  ;;  %v137_v27 = vld [vmem:[#allocation4 + $0x18] sm:$0xff]  ;;  %v96_v28 = vld [vmem:[#allocation2] sm:$0xff] }
  0x1c   :  { %155 = vmatpush.msra.mxu1 %v145_v11  ;;  %v95_v29 = vld [vmem:[%s449_s0] sm:$0xff]  ;;  %v136_v30 = vld [vmem:[#allocation4 + $0x10] sm:$0xff]  ;;  %v135_v31 = vld [vmem:[#allocation4 + $0x8] sm:$0xff] }
  0x1d   :  { %118 = vmatpush.msra.mxu0 %v106_v8  ;;  %v134_v32 = vld [vmem:[#allocation4] sm:$0xff]  ;;  %v187_v33 = vld [vmem:[#allocation6 + $0x78] sm:$0xff]  ;;  %v186_v34 = vld [vmem:[#allocation6 + $0x70] sm:$0xff] }
  0x1e   :  { %156 = vmatpush.msra.mxu1 %v144_v13  ;;  %189 = vmatpush.msra.mxu2 %v187_v33  ;;  %v185_v35 = vld [vmem:[#allocation6 + $0x68] sm:$0xff]  ;;  %v184_v36 = vld [vmem:[#allocation6 + $0x60] sm:$0xff]  ;;  %v183_v37 = vld [vmem:[#allocation6 + $0x58] sm:$0xff] }
  0x1f   :  { %119 = vmatpush.msra.mxu0 %v105_v10  ;;  %v182_v38 = vld [vmem:[#allocation6 + $0x50] sm:$0xff]  ;;  %v181_v39 = vld [vmem:[#allocation6 + $0x48] sm:$0xff]  ;;  %v180_v40 = vld [vmem:[#allocation6 + $0x40] sm:$0xff] }
  0x20   :  { %157 = vmatpush.msra.mxu1 %v143_v15  ;;  %190 = vmatpush.msra.mxu2 %v186_v34  ;;  %v179_v41 = vld [vmem:[#allocation6 + $0x38] sm:$0xff]  ;;  %v178_v42 = vld [vmem:[#allocation6 + $0x30] sm:$0xff]  ;;  %v177_v43 = vld [vmem:[#allocation6 + $0x28] sm:$0xff] }
  0x21   :  { %120 = vmatpush.msra.mxu0 %v104_v12  ;;  %v176_v44 = vld [vmem:[#allocation6 + $0x20] sm:$0xff]  ;;  %v175_v45 = vld [vmem:[#allocation6 + $0x18] sm:$0xff]  ;;  %v174_v50 = vld [vmem:[#allocation6 + $0x10] sm:$0xff] }
  0x22   :  { %158 = vmatpush.msra.mxu1 %v142_v17  ;;  %191 = vmatpush.msra.mxu2 %v185_v35  ;;  %v112_v46 = vld [vmem:[%s451_s2] sm:$0xff]  ;;  %v173_v51 = vld [vmem:[#allocation6 + $0x8] sm:$0xff]  ;;  %v225_v53 = vld [vmem:[#allocation7 + $0x78] sm:$0xff] }
  0x23   :  { %121 = vmatpush.msra.mxu0 %v103_v14  ;;  %v172_v52 = vld [vmem:[#allocation6] sm:$0xff]  ;;  %v224_v54 = vld [vmem:[#allocation7 + $0x70] sm:$0xff]  ;;  %227 = vmatpush.msra.mxu3 %v225_v53  ;;  %v223_v55 = vld [vmem:[#allocation7 + $0x68] sm:$0xff] }
  0x24   :  { %159 = vmatpush.msra.mxu1 %v141_v19  ;;  %192 = vmatpush.msra.mxu2 %v184_v36  ;;  %v222_v56 = vld [vmem:[#allocation7 + $0x60] sm:$0xff]  ;;  %v221_v57 = vld [vmem:[#allocation7 + $0x58] sm:$0xff]  ;;  %v220_v58 = vld [vmem:[#allocation7 + $0x50] sm:$0xff] }
  0x25   :  { %122 = vmatpush.msra.mxu0 %v102_v16  ;;  %228 = vmatpush.msra.mxu3 %v224_v54  ;;  %v219_v59 = vld [vmem:[#allocation7 + $0x48] sm:$0xff]  ;;  %v218_v60 = vld [vmem:[#allocation7 + $0x40] sm:$0xff]  ;;  %v217_v61 = vld [vmem:[#allocation7 + $0x38] sm:$0xff] }
  0x26   :  { %160 = vmatpush.msra.mxu1 %v140_v21  ;;  %193 = vmatpush.msra.mxu2 %v183_v37  ;;  %v216_v62 = vld [vmem:[#allocation7 + $0x30] sm:$0xff]  ;;  %v215_v63 = vld [vmem:[#allocation7 + $0x28] sm:$0xff]  ;;  %v214_v0 = vld [vmem:[#allocation7 + $0x20] sm:$0xff] }
  0x27   :  { %123 = vmatpush.msra.mxu0 %v101_v18  ;;  %229 = vmatpush.msra.mxu3 %v223_v55  ;;  %v213_v1 = vld [vmem:[#allocation7 + $0x18] sm:$0xff]  ;;  %v150_v2 = vld [vmem:[%s453_s4] sm:$0xff]  ;;  %v212_v6 = vld [vmem:[#allocation7 + $0x10] sm:$0xff] }
  0x28   :  { %161 = vmatpush.msra.mxu1 %v139_v23  ;;  %194 = vmatpush.msra.mxu2 %v182_v38  ;;  %v211_v7 = vld [vmem:[#allocation7 + $0x8] sm:$0xff]  ;;  %v210_v8 = vld [vmem:[#allocation7] sm:$0xff] }
  0x29   :  { %124 = vmatpush.msra.mxu0 %v100_v20  ;;  %230 = vmatpush.msra.mxu3 %v222_v56  ;;  %v188_v9 = vld [vmem:[%s455_s6] sm:$0xff] }
  0x2a   :  { %162 = vmatpush.msra.mxu1 %v138_v25  ;;  %195 = vmatpush.msra.mxu2 %v181_v39  ;;  %v226_v13 = vld [vmem:[%s457_s8] sm:$0xff] }
  0x2b   :  { %125 = vmatpush.msra.mxu0 %v99_v22  ;;  %231 = vmatpush.msra.mxu3 %v221_v57 }
  0x2c   :  { %163 = vmatpush.msra.mxu1 %v137_v27  ;;  %196 = vmatpush.msra.mxu2 %v180_v40 }
  0x2d   :  { %126 = vmatpush.msra.mxu0 %v98_v24  ;;  %232 = vmatpush.msra.mxu3 %v220_v58 }
  0x2e   :  { %164 = vmatpush.msra.mxu1 %v136_v30  ;;  %197 = vmatpush.msra.mxu2 %v179_v41 }
  0x2f   :  { %127 = vmatpush.msra.mxu0 %v97_v26  ;;  %233 = vmatpush.msra.mxu3 %v219_v59 }
  0x30   :  { %165 = vmatpush.msra.mxu1 %v135_v31  ;;  %198 = vmatpush.msra.mxu2 %v178_v42 }
  0x31   :  { %128 = vmatpush.msra.mxu0 %v96_v28  ;;  %234 = vmatpush.msra.mxu3 %v218_v60 }
  0x32   :  { %129 = vmatmul.f32.vlgmr.msra.gmra.mxu0 %v95_v29  ;;  %166 = vmatpush.msra.mxu1 %v134_v32 }
  0x33   :  { %199 = vmatpush.msra.mxu2 %v177_v43  ;;  %235 = vmatpush.msra.mxu3 %v217_v61 }
  0x35   :  { %200 = vmatpush.msra.mxu2 %v176_v44  ;;  %236 = vmatpush.msra.mxu3 %v216_v62 }
  0x37   :  { %201 = vmatpush.msra.mxu2 %v175_v45  ;;  %237 = vmatpush.msra.mxu3 %v215_v63 }
  0x39   :  { %202 = vmatpush.msra.mxu2 %v174_v50  ;;  %238 = vmatpush.msra.mxu3 %v214_v0 }
  0x3b   :  { %203 = vmatpush.msra.mxu2 %v173_v51  ;;  %239 = vmatpush.msra.mxu3 %v213_v1 }
  0x3d   :  { %204 = vmatpush.msra.mxu2 %v172_v52  ;;  %240 = vmatpush.msra.mxu3 %v212_v6 }
  0x3f   :  { %241 = vmatpush.msra.mxu3 %v211_v7 }
  0x41   :  { %242 = vmatpush.msra.mxu3 %v210_v8 }
  0xaf   :  { %v130_v47 = vpop.f32.mrf.mxu0 }
  0xb0   :  { %v131_v48 = vadd.f32 %v130_v47, %v112_v46 }
  0xb2   :  { %v133_v49 = vmax.f32 %v131_v48, 0.0 }
  0xb4   :  { %167 = vmatmul.f32.vlgmr.msra.gmra.mxu1 %v133_v49 }
 0x131   :  { %v168_v3 = vpop.f32.mrf.mxu1 }
 0x132   :  { %v169_v4 = vadd.f32 %v168_v3, %v150_v2 }
 0x134   :  { %v171_v5 = vmax.f32 %v169_v4, 0.0 }
 0x136   :  { %205 = vmatmul.f32.vlgmr.msra.gmra.mxu2 %v171_v5 }
 0x1b9   :  { %v206_v10 = vpop.f32.mrf.mxu2 }
 0x1ba   :  { %v207_v11 = vadd.f32 %v206_v10, %v188_v9 }
 0x1bc   :  { %v209_v12 = vmax.f32 %v207_v11, 0.0 }
 0x1be   :  { %243 = vmatmul.f32.vlgmr.msra.gmra.mxu3 %v209_v12 }
 0x241   :  { %v244_v14 = vpop.f32.mrf.mxu3 }
 0x242   :  { %v245_v15 = vadd.f32 %v244_v14, %v226_v13 }
 0x244   :  { %247 = vst [vmem:[%s458_s9] sm:$0xff] %v245_v15 }
 0x245   :  { %252 = vsyncpa [#allocation3], 1 }
 0x246   :  { %253 = vsyncpa [#allocation5], 1 }
 0x247   :  { %254 = vsyncpa [#allocation8], 1 }

</bundles_post_ra>
